<compile_context>
chip_gen: v5e
topology: v5e:2x2
jax: 0.10.0
libtpu: 0.0.40
codegen_flags: <defaults>
</compile_context>

<pallas_src>
import math
import numpy as np

import jax
import jax.numpy as jnp
from jax import lax
from jax.experimental import pallas as pl
from jax.experimental.pallas import tpu as pltpu

BN_EPS = 1e-5


# ---------------------------------------------------------------------------
# kernels
# ---------------------------------------------------------------------------
def _conv_tile(x_ref, w_ref):
    """Fused (1x1 + 3x3) conv for one image tile.

    x_ref: (H+2, (W+2)*C1)      padded NHWC rows; lanes = (padded w, ci)
    w_ref: (3, (W+2)*C1, W*c2)  block-Toeplitz weights, one slab per row tap
    returns y: (H, W*c2) f32;   lanes = (w, co), co in cat([1x1, 3x3]) order
    """
    hp2, _ = x_ref.shape
    h = hp2 - 2
    wc2 = w_ref.shape[-1]
    x = x_ref[...]                                   # single load of the tile
    y = jnp.zeros((h, wc2), jnp.float32)
    for dh in range(3):                              # unrolled: 3 MXU pushes
        y += jnp.dot(x[dh:dh + h, :], w_ref[dh],
                     preferred_element_type=jnp.float32)
    return y


def _stats_kernel(x_ref, w_ref, acc_ref):
    """Pass 1: conv + accumulate per-(w, co) sum and sum-of-squares."""
    @pl.when(pl.program_id(0) == 0)
    def _():
        acc_ref[...] = jnp.zeros_like(acc_ref)

    y = _conv_tile(x_ref, w_ref)                            # (H, W*c2) f32
    s = jnp.sum(y, axis=0, keepdims=True)                   # (1, W*c2)
    s2 = jnp.sum(y * y, axis=0, keepdims=True)              # (1, W*c2)
    acc_ref[...] += jnp.concatenate([s, s2], axis=0)        # (2, W*c2)


def _apply_kernel(x_ref, w_ref, ss_ref, o_ref):
    """Pass 2: conv + folded BatchNorm (y*scale + shift), lane-dense store."""
    y = _conv_tile(x_ref, w_ref)
    ss = ss_ref[...]                                        # (2, W*c2)
    o_ref[...] = (y * ss[0:1, :] + ss[1:2, :]).astype(o_ref.dtype)


# ---------------------------------------------------------------------------
# wrapper
# ---------------------------------------------------------------------------
def _build_toeplitz_weight(w1_pt, w3_pt, W):
    """Pack OIHW conv weights of both groups into one block-Toeplitz matrix.

    WB[dh, wp*C1+ci, w*c2+co] reproduces cat([conv1x1(x), conv3x3(x)], ch) at
    pixel (h, w) when contracted against padded input rows h, h+1, h+2.
    One-time, trace-time packing (numpy).
    """
    w1 = np.asarray(w1_pt, np.float32)          # (c0, C1, 1, 1)
    w3 = np.asarray(w3_pt, np.float32)          # (c3, C1, 3, 3)
    c0, C1 = w1.shape[0], w1.shape[1]
    c2 = c0 + w3.shape[0]
    wb = np.zeros((3, (W + 2) * C1, W * c2), np.float32)
    for w in range(W):
        # group 0: 1x1 conv -> centre tap (dh=1, dw=1), output cols [0, c0)
        wb[1, (w + 1) * C1:(w + 2) * C1, w * c2:w * c2 + c0] = w1[:, :, 0, 0].T
        # group 1: 3x3 conv (pad=1) -> all 9 taps, output cols [c0, c2)
        for dh in range(3):
            for dw in range(3):
                wb[dh, (w + dw) * C1:(w + dw + 1) * C1,
                   w * c2 + c0:(w + 1) * c2] = w3[:, :, dh, dw].T
    return wb


def mixconv2d_forward(x_nchw, w1_pt, w3_pt, gamma, beta,
                      compute_dtype=jnp.float32):
    """x_nchw: (N, C1, H, W); weights in PyTorch OIHW layout."""
    N, C1, H, W = x_nchw.shape
    c0, c3 = w1_pt.shape[0], w3_pt.shape[0]
    c2 = c0 + c3
    assert w1_pt.shape[2:] == (1, 1) and w3_pt.shape[2:] == (3, 3)

    WPC1 = (W + 2) * C1          # lanes of a padded input row
    WC2 = W * c2                 # lanes of an output row (lane-dense)

    # ---- layout prep (cheap XLA glue). NCHW<->NHWC kept only to match the
    # PyTorch-facing interface; in a full model do this once, not per layer.
    x_nhwc = jnp.transpose(x_nchw, (0, 2, 3, 1))
    xpad = jnp.pad(x_nhwc, ((0, 0), (1, 1), (1, 1), (0, 0)))   # spatial halo
    x_rows = xpad.reshape(N, H + 2, WPC1).astype(compute_dtype)

    wb = jnp.asarray(_build_toeplitz_weight(w1_pt, w3_pt, W), compute_dtype)

    x_spec = pl.BlockSpec((None, H + 2, WPC1), lambda n: (n, 0, 0))
    w_spec = pl.BlockSpec((3, WPC1, WC2), lambda n: (0, 0, 0))

    # ---- pass 1: global batch statistics (sum / sumsq per (w, co)) --------
    stats = pl.pallas_call(
        _stats_kernel,
        out_shape=jax.ShapeDtypeStruct((2, WC2), jnp.float32),
        grid_spec=pltpu.PrefetchScalarGridSpec(
            num_scalar_prefetch=0,
            grid=(N,),
            in_specs=[x_spec, w_spec],
            out_specs=pl.BlockSpec((2, WC2), lambda n: (0, 0)),
        ),
        compiler_params=pltpu.CompilerParams(
            dimension_semantics=("arbitrary",)),   # accumulator carried
    )(x_rows, wb)

    # fold BN into one FMA: scale = gamma*rsqrt(var+eps), shift = beta - mean*scale
    count = float(N * H * W)
    sum_c = stats[0].reshape(W, c2).sum(axis=0)
    sumsq_c = stats[1].reshape(W, c2).sum(axis=0)
    mean = sum_c / count
    var = jnp.maximum(sumsq_c / count - mean * mean, 0.0)
    scale = gamma * lax.rsqrt(var + BN_EPS)
    shift = beta - mean * scale
    ss = jnp.stack([jnp.tile(scale, W), jnp.tile(shift, W)], axis=0)  # (2, W*c2)

    # ---- pass 2: conv + folded BN, lane-dense (N, H, W*c2) output ---------
    out_rows = pl.pallas_call(
        _apply_kernel,
        out_shape=jax.ShapeDtypeStruct((N, H, WC2), jnp.float32),
        grid_spec=pltpu.PrefetchScalarGridSpec(
            num_scalar_prefetch=0,
            grid=(N,),
            in_specs=[x_spec, w_spec,
                      pl.BlockSpec((2, WC2), lambda n: (0, 0))],
            out_specs=pl.BlockSpec((None, H, WC2), lambda n: (n, 0, 0)),
        ),
        compiler_params=pltpu.CompilerParams(
            dimension_semantics=("parallel",)),    # independent images: megacore
    )(x_rows, wb, ss)

    out = out_rows.reshape(N, H, W, c2)
    return jnp.transpose(out, (0, 3, 1, 2))        # back to NCHW


# ---------------------------------------------------------------------------
# pure-JAX reference (same math as the PyTorch training-mode forward)
# ---------------------------------------------------------------------------
def reference_forward(x, w1_pt, w3_pt, gamma, beta):
    y0 = lax.conv_general_dilated(
        x, w1_pt, (1, 1), 'VALID',
        dimension_numbers=('NCHW', 'OIHW', 'NCHW'))
    y1 = lax.conv_general_dilated(
        x, w3_pt, (1, 1), ((1, 1), (1, 1)),
        dimension_numbers=('NCHW', 'OIHW', 'NCHW'))
    y = jnp.concatenate([y0, y1], axis=1)
    mean = jnp.mean(y, axis=(0, 2, 3), keepdims=True)
    var = jnp.mean((y - mean) ** 2, axis=(0, 2, 3), keepdims=True)
    y_hat = (y - mean) / jnp.sqrt(var + BN_EPS)
    return y_hat * gamma.reshape(1, -1, 1, 1) + beta.reshape(1, -1, 1, 1)


if __name__ == "__main__":
    # module config: MixConv2d(c1=4, c2=8, k=(1, 3), s=1, equal_ch=True)
    c1, c2, k = 4, 8, (1, 3)
    groups = len(k)
    i = np.floor(np.linspace(0, groups - 1e-06, c2))
    c_ = [int((i == g).sum()) for g in range(groups)]    # -> [4, 4]

    key = jax.random.PRNGKey(0)
    kx, k1, k3 = jax.random.split(key, 3)

    N, H, W = 2, 16, 16
    x = jax.random.normal(kx, (N, c1, H, W), dtype=jnp.float32)

    # deterministic conv weights (kaiming-uniform-style bounds), OIHW layout
    b1 = 1.0 / math.sqrt(c1 * k[0] * k[0])
    b3 = 1.0 / math.sqrt(c1 * k[1] * k[1])
    w1_pt = jax.random.uniform(k1, (c_[0], c1, 1, 1), jnp.float32, -b1, b1)
    w3_pt = jax.random.uniform(k3, (c_[1], c1, 3, 3), jnp.float32, -b3, b3)

    # BatchNorm2d default init: weight=1, bias=0
    gamma = jnp.ones((c2,), jnp.float32)
    beta = jnp.zeros((c2,), jnp.float32)

    # --- f32 path: tight check against the pure-JAX reference --------------
    out = jax.block_until_ready(
        mixconv2d_forward(x, w1_pt, w3_pt, gamma, beta,
                          compute_dtype=jnp.float32))
    ref = reference_forward(x, w1_pt, w3_pt, gamma, beta)
    assert out.shape == (N, c2, H, W)
    assert jnp.allclose(out, ref, atol=1e-4, rtol=1e-4), "f32 mismatch vs ref"

    # --- bf16 path (halved HBM read traffic; f32 accumulation) -------------
    # Compare against the reference on bf16-rounded inputs/weights: bf16*bf16
    # products are exact in f32, so only accumulation order differs.
    out_bf = jax.block_until_ready(
        mixconv2d_forward(x, w1_pt, w3_pt, gamma, beta,
                          compute_dtype=jnp.bfloat16))
    rd = lambda a: a.astype(jnp.bfloat16).astype(jnp.float32)
    ref_bf = reference_forward(rd(x), rd(w1_pt), rd(w3_pt), gamma, beta)
    assert jnp.allclose(out_bf, ref_bf, atol=1e-2, rtol=1e-2), "bf16 mismatch"

    print("KERNEL_OK")
</pallas_src>

<mosaic_0001>
module attributes {stable_mosaic.version = 11 : i64} {
  func.func @_stats_kernel(%arg0: i32, %arg1: memref<1x18x72xf32, #tpu.memory_space<vmem>>, %arg2: memref<3x72x128xf32, #tpu.memory_space<vmem>>, %arg3: memref<2x128xf32, #tpu.memory_space<vmem>>) attributes {dimension_semantics = [#tpu.dimension_semantics<arbitrary>], iteration_bounds = array<i64: 2>, scalar_prefetch = 0 : i64, scratch_operands = 0 : i64, tpu.core_type = #tpu.core_type<tc>, window_params = [{transform_indices = @transform_0, window_bounds = array<i64: 1, 18, 72>}, {pipeline_mode = #tpu.pipeline_mode<synchronous>, transform_indices = @transform_1, window_bounds = array<i64: 3, 72, 128>}, {pipeline_mode = #tpu.pipeline_mode<synchronous>, transform_indices = @transform_2, window_bounds = array<i64: 2, 128>}]} {
    %c0_i32 = arith.constant 0 : i32
    %0 = arith.cmpi eq, %arg0, %c0_i32 : i32
    %1 = arith.extui %0 : i1 to i32
    %c0_i32_0 = arith.constant 0 : i32
    %2 = arith.cmpi ne, %1, %c0_i32_0 : i32
    scf.if %2 {
      %cst_19 = arith.constant 0.000000e+00 : f32
      %30 = vector.broadcast %cst_19 : f32 to vector<2x128xf32>
      %c0_20 = arith.constant 0 : index
      %c0_21 = arith.constant 0 : index
      %31 = vector.load %arg3[%c0_20, %c0_21] : memref<2x128xf32, #tpu.memory_space<vmem>>, vector<2x128xf32>
      tpu.vector_store %arg3[%c0_20, %c0_21], %30 {strides = array<i32>} : memref<2x128xf32, #tpu.memory_space<vmem>>, vector<2x128xf32>,
    } else {
    }
    %c0 = arith.constant 0 : index
    %c0_1 = arith.constant 0 : index
    %c0_2 = arith.constant 0 : index
    %3 = vector.load %arg1[%c0, %c0_1, %c0_2] : memref<1x18x72xf32, #tpu.memory_space<vmem>>, vector<1x18x72xf32>
    %4 = vector.shape_cast %3 : vector<1x18x72xf32> to vector<18x72xf32>
    %cst = arith.constant 0.000000e+00 : f32
    %5 = vector.broadcast %cst : f32 to vector<16x128xf32>
    %6 = vector.extract_strided_slice %4 {offsets = [0, 0], sizes = [16, 72], strides = [1, 1]} : vector<18x72xf32> to vector<16x72xf32>
    %c0_3 = arith.constant 0 : index
    %c0_4 = arith.constant 0 : index
    %c0_5 = arith.constant 0 : index
    %7 = vector.load %arg2[%c0_3, %c0_4, %c0_5] : memref<3x72x128xf32, #tpu.memory_space<vmem>>, vector<1x72x128xf32>
    %8 = vector.shape_cast %7 : vector<1x72x128xf32> to vector<72x128xf32>
    %cst_6 = arith.constant dense<0.000000e+00> : vector<16x128xf32>
    %9 = tpu.matmul %6, %8, %cst_6 {dimension_numbers = #tpu.dot_dimension_numbers<[1], [0], [0], [1], [0, 0, 1, 1], [], []>} : vector<16x72xf32>, vector<72x128xf32>, vector<16x128xf32> -> vector<16x128xf32>
    %10 = arith.addf %5, %9 : vector<16x128xf32>
    %11 = vector.extract_strided_slice %4 {offsets = [1, 0], sizes = [16, 72], strides = [1, 1]} : vector<18x72xf32> to vector<16x72xf32>
    %c1 = arith.constant 1 : index
    %c0_7 = arith.constant 0 : index
    %c0_8 = arith.constant 0 : index
    %12 = vector.load %arg2[%c1, %c0_7, %c0_8] : memref<3x72x128xf32, #tpu.memory_space<vmem>>, vector<1x72x128xf32>
    %13 = vector.shape_cast %12 : vector<1x72x128xf32> to vector<72x128xf32>
    %cst_9 = arith.constant dense<0.000000e+00> : vector<16x128xf32>
    %14 = tpu.matmul %11, %13, %cst_9 {dimension_numbers = #tpu.dot_dimension_numbers<[1], [0], [0], [1], [0, 0, 1, 1], [], []>} : vector<16x72xf32>, vector<72x128xf32>, vector<16x128xf32> -> vector<16x128xf32>
    %15 = arith.addf %10, %14 : vector<16x128xf32>
    %16 = vector.extract_strided_slice %4 {offsets = [2, 0], sizes = [16, 72], strides = [1, 1]} : vector<18x72xf32> to vector<16x72xf32>
    %c2 = arith.constant 2 : index
    %c0_10 = arith.constant 0 : index
    %c0_11 = arith.constant 0 : index
    %17 = vector.load %arg2[%c2, %c0_10, %c0_11] : memref<3x72x128xf32, #tpu.memory_space<vmem>>, vector<1x72x128xf32>
    %18 = vector.shape_cast %17 : vector<1x72x128xf32> to vector<72x128xf32>
    %cst_12 = arith.constant dense<0.000000e+00> : vector<16x128xf32>
    %19 = tpu.matmul %16, %18, %cst_12 {dimension_numbers = #tpu.dot_dimension_numbers<[1], [0], [0], [1], [0, 0, 1, 1], [], []>} : vector<16x72xf32>, vector<72x128xf32>, vector<16x128xf32> -> vector<16x128xf32>
    %20 = arith.addf %15, %19 : vector<16x128xf32>
    %cst_13 = arith.constant dense<0.000000e+00> : vector<128xf32>
    %21 = vector.multi_reduction <add>, %20, %cst_13 [0] : vector<16x128xf32> to vector<128xf32>
    %22 = vector.shape_cast %21 : vector<128xf32> to vector<1x128xf32>
    %23 = arith.mulf %20, %20 : vector<16x128xf32>
    %cst_14 = arith.constant dense<0.000000e+00> : vector<128xf32>
    %24 = vector.multi_reduction <add>, %23, %cst_14 [0] : vector<16x128xf32> to vector<128xf32>
    %25 = vector.shape_cast %24 : vector<128xf32> to vector<1x128xf32>
    %c0_15 = arith.constant 0 : index
    %c0_16 = arith.constant 0 : index
    %26 = vector.load %arg3[%c0_15, %c0_16] : memref<2x128xf32, #tpu.memory_space<vmem>>, vector<2x128xf32>
    %27 = tpu.concatenate %22, %25 in 0 : vector<1x128xf32>, vector<1x128xf32> -> vector<2x128xf32>
    %28 = arith.addf %26, %27 : vector<2x128xf32>
    %c0_17 = arith.constant 0 : index
    %c0_18 = arith.constant 0 : index
    %29 = vector.load %arg3[%c0_17, %c0_18] : memref<2x128xf32, #tpu.memory_space<vmem>>, vector<2x128xf32>
    tpu.vector_store %arg3[%c0_17, %c0_18], %28 {strides = array<i32>} : memref<2x128xf32, #tpu.memory_space<vmem>>, vector<2x128xf32>,
    return
  }
  func.func @transform_0(%arg0: i32) -> (i32, i32, i32) {
    %c0_i32 = arith.constant 0 : i32
    %c0_i32_0 = arith.constant 0 : i32
    %c0_i32_1 = arith.constant 0 : i32
    return %arg0, %c0_i32, %c0_i32_0 : i32, i32, i32
  }
  func.func @transform_1(%arg0: i32) -> (i32, i32, i32) {
    %c0_i32 = arith.constant 0 : i32
    %c0_i32_0 = arith.constant 0 : i32
    %c0_i32_1 = arith.constant 0 : i32
    %c0_i32_2 = arith.constant 0 : i32
    return %c0_i32, %c0_i32_0, %c0_i32_1 : i32, i32, i32
  }
  func.func @transform_2(%arg0: i32) -> (i32, i32) {
    %c0_i32 = arith.constant 0 : i32
    %c0_i32_0 = arith.constant 0 : i32
    %c0_i32_1 = arith.constant 0 : i32
    return %c0_i32, %c0_i32_0 : i32, i32
  }
}

</mosaic_0001>

<bundles_post_ra>
// kernel: tpu_custom_call.1
= control target key start
LH: loop header
LB: loop body
LE: loop exit
PB: predicated region body
PF: predicated region fallthrough
CT: control target
= control target key end

     0   :  { %7 = vsyncpa [#allocation3], 0  ;;  %s559_s0 = inlined_call_operand.vmem [shape: f32[2,18,72], index: 0, kind: input, shape index: {}]   ;;  %s560_s1 = inlined_call_operand.hbm [shape: f32[3,72,128], index: 1, kind: input, shape index: {}]   ;;  %s561_s2 = inlined_call_operand.hbm [shape: f32[2,128], index: 2, kind: output, shape index: {}]  }
   0x1   :  { %8 = vsyncpa [#allocation4], 0  ;;  %s515_s9 = smov 0  }
   0x2 LB: > { %s98_s12 = sshll.u32 %s560_s1, 4  ;;  %s524_s13 = sadd.s32 4294967295, %s493_s9   ;;  %s493_s9 = sphi %s515_s9, %s14_s9   ;;  %s99_s12 = int_to_ptr.hbm [resolvable:$true] %s98_s12 }
   0x3   : > { %p365_p0 = scmp.ge.s32.totalorder %s493_s9, 1  ;;  %p87_p1 = scmp.lt.s32.totalorder %s493_s9, 3 }
   0x4   : > { %p366_p2 = scmp.ne.s32.totalorder %s524_s13, 0  ;;  %p404_p3 = scmp.eq.s32.totalorder %s524_s13, 0 }
   0x5   : > { %p88_p4 = pnand %p365_p0, %p87_p1  ;;  %s495_s14 = smov [#allocation2]  }
   0x6   : > { %s100_s15 = sshll.u32 %s495_s14, 4  ;;  %s496_s16 = smov 128   ;;  %s101_s15 = int_to_ptr.vmem [resolvable:$true] %s100_s15 }
   0x7   : > { %p400_p5 = pneg %p88_p4  ;;  %s497_s17 = smov 8  }
   0x8   : > { %124 = sbr.rel (%p88_p4) target bundleno = 207 (0xcf), region = 28 }
   0x9   : > { %p401_p6 = pnand %p404_p3, %p400_p5 }
   0xb   : > { %403 = dma.hbm_to_vmem [thread:$0]  (!%p401_p6), %s99_s12, 3456, %s101_s15, [#allocation3], %s496_s16, %s496_s16, %s497_s17  }
   0xd   : > { %484 = dma.done.wait (%p404_p3), [#allocation3], 3456  }
   0xe   : > { %486 = vsyncadd (%p404_p3), [#allocation3], 4294963840  ;;  %p142_p7 = scmp.lt.s32.totalorder %s524_s13, 1 }
  0x10   : > { %s143_s18 = scalar_select %p142_p7, %s524_s13, 1 }
  0x11   : > { %150 = sbr.rel (%p366_p2) target bundleno = 24 (0x18), region = 36 }
  0x12   : > { %s391_s19 = smul.u32 24, %s143_s18 }
  0x14   : > { %s535_s22 = scalar_lea.vmem %s559_s0, %s391_s19 }
  0x16   : > { %v498_v0 = vmov 0.0  }
  0x17   : > { %151 = vst [vmem:[#allocation5] sm:$0x3] %v498_v0 }
  0x18 PF: > { %v247_v1 = vld [vmem:[#allocation2 + $0xd0] sm:$0xff]  ;;  %v246_v2 = vld [vmem:[#allocation2 + $0xc8] sm:$0xff]  ;;  %v163_v4 = vld [vmem:[#allocation2 + $0x40] sm:$0xff]  ;;  %vm248_vm0 = vcmask 1045504   ;;  %vm177_vm1 = vcmask 1046528   ;;  %vm183_vm2 = vcmask 588800  }
  0x19   : > { %v173_v3 = vld [vmem:[#allocation2 + $0x88] sm:$0xff]  ;;  %265 = vmatpush.msra.mxu2 %v247_v1  ;;  %v172_v5 = vld [vmem:[#allocation2 + $0x80] sm:$0xff]  ;;  %222 = vmatpush.msra.mxu1 %v163_v4  ;;  %v162_v7 = vld [vmem:[#allocation2 + $0x38] sm:$0xff]  ;;  %vm300_vm3 = vcmask 1040384   ;;  %s499_s23 = smov [#allocation5]   ;;  %s312_s27 = sshll.u32 %s561_s2, 4  ;;  %s313_s27 = int_to_ptr.hbm [resolvable:$true] %s312_s27 }
  0x1a   : > { %195 = vmatpush.msra.mxu0 %v173_v3  ;;  %v245_v6 = vld [vmem:[#allocation2 + $0xc0] sm:$0xff]  ;;  %382 = vmatpush.msra.mxu3 %v173_v3  ;;  %v171_v8 = vld [vmem:[#allocation2 + $0x78] sm:$0xff]  ;;  %v161_v9 = vld [vmem:[#allocation2 + $0x30] sm:$0xff]  ;;  %s310_s24 = sshll.u32 %s499_s23, 4  ;;  %p406_p8 = scmp.eq.s32.totalorder %s524_s13, 1  ;;  %s311_s24 = int_to_ptr.vmem [resolvable:$true] %s310_s24 }
  0x1b   : > { %266 = vmatpush.msra.mxu2 %v246_v2  ;;  %223 = vmatpush.msra.mxu1 %v162_v7  ;;  %v244_v10 = vld [vmem:[#allocation2 + $0xb8] sm:$0xff]  ;;  %v170_v11 = vld [vmem:[#allocation2 + $0x70] sm:$0xff]  ;;  %v160_v12 = vld [vmem:[#allocation2 + $0x28] sm:$0xff] }
  0x1c   : > { %196 = vmatpush.msra.mxu0 %v172_v5  ;;  %383 = vmatpush.msra.mxu3 %v172_v5  ;;  %v243_v13 = vld [vmem:[#allocation2 + $0xb0] sm:$0xff]  ;;  %v169_v14 = vld [vmem:[#allocation2 + $0x68] sm:$0xff]  ;;  %v159_v16 = vld [vmem:[#allocation2 + $0x20] sm:$0xff] }
  0x1d   : > { %267 = vmatpush.msra.mxu2 %v245_v6  ;;  %224 = vmatpush.msra.mxu1 %v161_v9  ;;  %v242_v15 = vld [vmem:[#allocation2 + $0xa8] sm:$0xff]  ;;  %v168_v17 = vld [vmem:[#allocation2 + $0x60] sm:$0xff]  ;;  %v158_v20 = vld [vmem:[#allocation2 + $0x18] sm:$0xff] }
  0x1e   : > { %197 = vmatpush.msra.mxu0 %v171_v8  ;;  %384 = vmatpush.msra.mxu3 %v171_v8  ;;  %v152_v18 = vld [vmem:[%s535_s22] sm:$0xff]  ;;  %v153_v19 = vld [vmem:[%s535_s22 + $0x8] sm:$0xff]  ;;  %v167_v22 = vld [vmem:[#allocation2 + $0x58] sm:$0xff] }
  0x1f   : > { %268 = vmatpush.msra.mxu2 %v244_v10  ;;  %225 = vmatpush.msra.mxu1 %v160_v12  ;;  %v241_v21 = vld [vmem:[#allocation2 + $0xa0] sm:$0xff]  ;;  %v157_v23 = vld [vmem:[#allocation2 + $0x10] sm:$0xff]  ;;  %v249_v24 = vrot.slane %v152_v18, 2  ;;  %v250_v25 = vrot.slane %v153_v19, 2  ;;  %v240_v27 = vld [vmem:[#allocation2 + $0x98] sm:$0xff]  ;;  %v178_v29 = vrot.slane %v152_v18, 1 }
  0x20   : > { %198 = vmatpush.msra.mxu0 %v170_v11  ;;  %385 = vmatpush.msra.mxu3 %v170_v11  ;;  %v154_v26 = vld [vmem:[%s535_s22 + $0x10] sm:$0x3]  ;;  %v179_v30 = vrot.slane %v153_v19, 1  ;;  %v156_v31 = vld [vmem:[#allocation2 + $0x8] sm:$0xff]  ;;  %v155_v36 = vld [vmem:[#allocation2] sm:$0xff] }
  0x21   : > { %269 = vmatpush.msra.mxu2 %v243_v13  ;;  %226 = vmatpush.msra.mxu1 %v159_v16  ;;  %v166_v28 = vld [vmem:[#allocation2 + $0x50] sm:$0xff]  ;;  %v165_v33 = vld [vmem:[#allocation2 + $0x48] sm:$0xff]  ;;  %v181_v34 = vrot.slane %v154_v26, 1  ;;  %v251_v35 = vsel %vm248_vm0, %v249_v24, %v250_v25  ;;  %v252_v39 = vrot.slane %v154_v26, 2  ;;  %v299_v3 = vld [vmem:[#allocation5] sm:$0x3] }
  0x22   : > { %199 = vmatpush.msra.mxu0 %v169_v14  ;;  %386 = vmatpush.msra.mxu3 %v169_v14  ;;  %v239_v32 = vld [vmem:[#allocation2 + $0x90] sm:$0xff]  ;;  %v180_v37 = vsel %vm177_vm1, %v178_v29, %v179_v30 }
  0x23   : > { %270 = vmatpush.msra.mxu2 %v242_v15  ;;  %227 = vmatpush.msra.mxu1 %v158_v20  ;;  %v182_v38 = vsel %vm177_vm1, %v179_v30, %v181_v34  ;;  %v253_v40 = vsel %vm248_vm0, %v250_v25, %v252_v39 }
  0x24   : > { %200 = vmatpush.msra.mxu0 %v168_v17  ;;  %387 = vmatpush.msra.mxu3 %v168_v17 }
  0x25   : > { %271 = vmatpush.msra.mxu2 %v241_v21  ;;  %228 = vmatpush.msra.mxu1 %v157_v23 }
  0x26   : > { %201 = vmatpush.msra.mxu0 %v167_v22  ;;  %388 = vmatpush.msra.mxu3 %v167_v22 }
  0x27   : > { %272 = vmatpush.msra.mxu2 %v240_v27  ;;  %229 = vmatpush.msra.mxu1 %v156_v31 }
  0x28   : > { %202 = vmatpush.msra.mxu0 %v166_v28  ;;  %389 = vmatpush.msra.mxu3 %v166_v28 }
  0x29   : > { %273 = vmatpush.msra.mxu2 %v239_v32  ;;  %230 = vmatpush.msra.mxu1 %v155_v36 }
  0x2a   : > { %203 = vmatpush.msra.mxu0 %v165_v33  ;;  %376 = vmatmul.msk.f32.vlgmr.msra.gmra.mxu2 %vm183_vm2, %v251_v35 }
  0x2b   : > { %372 = vmatmul.msk.f32.vlgmr.msra.gmra.mxu0 %vm183_vm2, %v180_v37  ;;  %374 = vmatmul.msk.f32.vlgmr.msra.gmra.mxu1 %vm183_vm2, %v152_v18 }
  0x2c   : > { %390 = vmatpush.msra.mxu3 %v165_v33 }
  0x2d   : > { %373 = vmatmul.msk.f32.vlgmr.msra.gmra.mxu3 %vm183_vm2, %v182_v38 }
  0x32   : > { %377 = vmatmul.msk.f32.gmra.mxu2 %vm183_vm2, %v253_v40 }
  0x33   : > { %375 = vmatmul.msk.f32.gmra.mxu1 %vm183_vm2, %v153_v19 }
  0xa8   : > { %v232_v41 = vpop.f32.mrf.mxu1  ;;  %v205_v42 = vpop.f32.mrf.mxu0 }
  0xa9   : > { %v233_v44 = vadd.f32 %v232_v41, %v205_v42 }
  0xad   : > { %v275_v43 = vpop.f32.mrf.mxu2 }
  0xae   : > { %v281_v48 = vadd.f32 %v275_v43, %v233_v44 }
  0xb0   : > { %v208_v45 = vpop.f32.mrf.mxu3  ;;  %v235_v46 = vpop.f32.mrf.mxu1  ;;  %v290_v51 = vmul.f32 %v281_v48, %v281_v48 }
  0xb1   : > { %v236_v47 = vadd.f32 %v235_v46, %v208_v45 }
  0xb5   : > { %v278_v49 = vpop.f32.mrf.mxu2 }
  0xb6   : > { %v282_v50 = vadd.f32 %v278_v49, %v236_v47 }
  0xb8   : > { %v283_v52 = vadd.f32 %v282_v50, %v281_v48  ;;  %v291_v53 = vmul.f32 %v282_v50, %v282_v50 }
  0xba   : > { %v284_v54 = vrot.slane %v283_v52, 4  ;;  %v292_v55 = vadd.f32 %v291_v53, %v290_v51 }
  0xbc   : > { %v285_v56 = vadd.f32 %v284_v54, %v283_v52  ;;  %v293_v57 = vrot.slane %v292_v55, 4 }
  0xbe   : > { %v286_v58 = vrot.slane %v285_v56, 2  ;;  %v294_v59 = vadd.f32 %v293_v57, %v292_v55 }
  0xc0   : > { %v287_v60 = vadd.f32 %v286_v58, %v285_v56  ;;  %v295_v61 = vrot.slane %v294_v59, 2 }
  0xc2   : > { %v288_v62 = vrot.slane %v287_v60, 1  ;;  %v296_v63 = vadd.f32 %v295_v61, %v294_v59 }
  0xc4   : > { %v297_v0 = vrot.slane %v296_v63, 1  ;;  %v289_v1 = vadd.f32 %v288_v62, %v287_v60 }
  0xc6   : > { %v298_v2 = vadd.f32 %v297_v0, %v296_v63 }
  0xc8   : > { %v301_v4 = vsel %vm300_vm3, %v289_v1, %v298_v2 }
  0xc9   : > { %v302_v5 = vadd.f32 %v301_v4, %v299_v3 }
  0xcb   : > { %303 = vst [vmem:[#allocation5] sm:$0x3] %v302_v5 }
  0xcc   : > { %397 = dma.vmem_to_hbm [thread:$0]  (%p406_p8), %s311_s24, 32, %s313_s27, [#allocation4]  }
  0xcd   : > { %488 = dma.done.wait (%p406_p8), [#allocation4], 32  }
  0xce   : > { %490 = vsyncadd (%p406_p8), [#allocation4], 4294967264 }
  0xcf PF: > { %s14_s9 = sadd.s32 1, %s493_s9  }
  0xd0   : > { %p11_p9 = scmp.ge.s32.totalorder %s14_s9, 4  }
  0xd2   :  { %13 = sbr.rel (!%p11_p9) target bundleno = 2 (0x2), region = 66 }
  0xd7   :  { %326 = vsyncpa [#allocation3], 1 }
  0xd8   :  { %328 = vsyncpa [#allocation3 + $0x1], 1 }
  0xd9   :  { %329 = vsyncpa [#allocation4], 1 }
  0xda   :  { %331 = vsyncpa [#allocation4 + $0x1], 1 }

</bundles_post_ra>
